<compile_context>
chip_gen: v7x
topology: tpu7x:2x2x1
jax: 0.10.0
libtpu: 0.0.40
codegen_flags: <defaults>
</compile_context>

<pallas_src>
import functools

import jax
import jax.numpy as jnp
from jax import lax
from jax.experimental import pallas as pl
from jax.experimental.pallas import tpu as pltpu


def _pick_k_tile(n, budget_bytes=4 << 20):
    """Largest k-chunk (divisor of n) whose (k_tile, n) f32 buffer fits budget."""
    if n * n * 4 <= budget_bytes:
        return n
    for cand in (2048, 1024, 512, 256, 128, 64, 32, 16, 8):
        if n % cand == 0 and cand * n * 4 <= budget_bytes:
            return cand
    return n  # fallback: no nice divisor, accept full width


def _lovasz_hinge_kernel(lg_row_ref, lb_row_ref, lg_col_ref, lb_col_ref, out_ref,
                         *, k_tile):
    # Per grid step (one image):
    #   lg_row_ref / lb_row_ref : (1, 1, N)   pixel index on lanes
    #   lg_col_ref / lb_col_ref : (1, N, 1)   pixel index on sublanes
    #   out_ref                 : (1, 1, 1)   per-image loss
    n = lg_row_ref.shape[-1]
    num_chunks = n // k_tile

    lg_r = lg_row_ref[0].astype(jnp.float32)          # (1, N)
    lb_r = lb_row_ref[0].astype(jnp.float32)          # (1, N)
    e_r = 1.0 - lg_r * (2.0 * lb_r - 1.0)             # (1, N) hinge errors e_j

    gts = jnp.sum(lb_r, keepdims=True)                # (1, 1) total positives
    j_idx = lax.broadcasted_iota(jnp.int32, (1, n), 1)  # lane iota (hoisted)

    def chunk_contrib(c, acc):
        k0 = pl.multiple_of(c * k_tile, k_tile)
        # k-chunk of errors, pixel index on sublanes.
        lg_ck = lg_col_ref[0, pl.ds(k0, k_tile), :].astype(jnp.float32)   # (TK, 1)
        lb_ck = lb_col_ref[0, pl.ds(k0, k_tile), :].astype(jnp.float32)   # (TK, 1)
        e_ck = 1.0 - lg_ck * (2.0 * lb_ck - 1.0)                          # (TK, 1)

        # precedes[k, j] = 1 iff pixel k comes strictly before pixel j in the
        # stable descending sort: (e_k > e_j) | (e_k == e_j & k < j).
        k_idx = k0 + lax.broadcasted_iota(jnp.int32, (k_tile, 1), 0)      # (TK, 1)
        gt = e_ck > e_r
        eq = e_ck == e_r
        tie = k_idx < j_idx
        prec = jnp.where(jnp.logical_or(gt, jnp.logical_and(eq, tie)),
                         jnp.float32(1.0), jnp.float32(0.0))              # (TK, N)

        # Fused MXU reduction: row 0 -> rank contribution, row 1 -> positive
        # predecessor count contribution.
        lb_rk = lb_row_ref[0, :, pl.ds(k0, k_tile)].astype(jnp.float32)   # (1, TK)
        sub2 = lax.broadcasted_iota(jnp.int32, (2, k_tile), 0)
        lhs = jnp.where(sub2 == 0, jnp.float32(1.0),
                        jnp.broadcast_to(lb_rk, (2, k_tile)))             # (2, TK)

        return acc + jnp.dot(lhs, prec, preferred_element_type=jnp.float32)

    acc0 = jnp.zeros((2, n), jnp.float32)
    acc = lax.fori_loop(0, num_chunks, chunk_contrib, acc0,
                        unroll=(num_chunks <= 8))

    rank = acc[0:1, :]      # (1, N) # strict predecessors  (== sorted position)
    ps = acc[1:2, :]        # (1, N) # positive strict predecessors
    cs = ps + lb_r          # cumsum of sorted labels evaluated at rank_j

    # jaccard at rank_j
    union = gts + (rank + 1.0) - cs
    jac = 1.0 - (gts - cs) / union

    # jaccard at rank_j - 1 (0 when rank_j == 0); cs_prev = ps.
    first = rank < 0.5
    union_prev = gts + rank - ps
    union_prev_safe = jnp.where(first, jnp.float32(1.0), union_prev)
    jac_prev = jnp.where(first, jnp.float32(0.0),
                         1.0 - (gts - ps) / union_prev_safe)

    grad = jac - jac_prev                                              # lovasz_grad
    loss = jnp.sum(jnp.maximum(e_r, 0.0) * grad, keepdims=True)        # (1, 1)
    out_ref[0] = loss


def lovasz_hinge_pallas(logits, labels):
    """logits, labels: (B, H, W). Returns scalar mean per-image Lovász hinge loss."""
    b = logits.shape[0]
    lg = logits.reshape(b, 1, -1).astype(jnp.float32)          # (B, 1, N)
    lb = labels.reshape(b, 1, -1).astype(jnp.float32)          # (B, 1, N)
    n = lg.shape[-1]
    lg_c = jnp.transpose(lg, (0, 2, 1))                        # (B, N, 1)
    lb_c = jnp.transpose(lb, (0, 2, 1))                        # (B, N, 1)

    k_tile = _pick_k_tile(n)
    kernel = functools.partial(_lovasz_hinge_kernel, k_tile=k_tile)

    per_image = pl.pallas_call(
        kernel,
        out_shape=jax.ShapeDtypeStruct((b, 1, 1), jnp.float32),
        grid_spec=pltpu.PrefetchScalarGridSpec(
            num_scalar_prefetch=0,
            grid=(b,),
            in_specs=[
                pl.BlockSpec((1, 1, n), lambda i: (i, 0, 0)),
                pl.BlockSpec((1, 1, n), lambda i: (i, 0, 0)),
                pl.BlockSpec((1, n, 1), lambda i: (i, 0, 0)),
                pl.BlockSpec((1, n, 1), lambda i: (i, 0, 0)),
            ],
            out_specs=pl.BlockSpec((1, 1, 1), lambda i: (i, 0, 0)),
        ),
        compiler_params=pltpu.CompilerParams(
            dimension_semantics=("parallel",)),
    )(lg, lb, lg_c, lb_c)
    return jnp.mean(per_image)


def lovasz_hinge_ref(logits, labels):
    """Pure-JAX reference (mirrors the PyTorch lovasz_hinge, per_image=True)."""
    b = logits.shape[0]
    lg = logits.reshape(b, -1).astype(jnp.float32)
    lb = labels.reshape(b, -1).astype(jnp.float32)

    def per_image(lgi, lbi):
        signs = 2.0 * lbi - 1.0
        errors = 1.0 - lgi * signs
        order = jnp.argsort(-errors)           # descending, stable
        errors_sorted = errors[order]
        gt_sorted = lbi[order]
        gts = jnp.sum(gt_sorted)
        intersection = gts - jnp.cumsum(gt_sorted)
        union = gts + jnp.cumsum(1.0 - gt_sorted)
        jac = 1.0 - intersection / union
        grad = jnp.concatenate([jac[:1], jac[1:] - jac[:-1]])
        return jnp.sum(jnp.maximum(errors_sorted, 0.0) * grad)

    return jnp.mean(jax.vmap(per_image)(lg, lb))


if __name__ == "__main__":
    key = jax.random.PRNGKey(0)
    k1, k2 = jax.random.split(key)
    B, H, W = 2, 16, 16
    logits = jax.random.normal(k1, (B, H, W), dtype=jnp.float32)
    labels = (jax.random.uniform(k2, (B, H, W)) > 0.5).astype(jnp.float32)

    out = lovasz_hinge_pallas(logits, labels)
    out = jax.block_until_ready(out)

    ref = lovasz_hinge_ref(logits, labels)
    assert jnp.allclose(out, ref, rtol=1e-3, atol=1e-3), (out, ref)
    print("KERNEL_OK")
</pallas_src>

<mosaic_0001>
module attributes {stable_mosaic.version = 11 : i64} {
  func.func @_lovasz_hinge_kernel(%arg0: i32, %arg1: memref<1x1x256xf32, #tpu.memory_space<vmem>>, %arg2: memref<1x1x256xf32, #tpu.memory_space<vmem>>, %arg3: memref<1x256x1xf32, #tpu.memory_space<vmem>>, %arg4: memref<1x256x1xf32, #tpu.memory_space<vmem>>, %arg5: memref<1x1x1xf32, #tpu.memory_space<vmem>>) attributes {dimension_semantics = [#tpu.dimension_semantics<parallel>], iteration_bounds = array<i64: 2>, scalar_prefetch = 0 : i64, scratch_operands = 0 : i64, tpu.core_type = #tpu.core_type<tc>, window_params = [{transform_indices = @transform_0, window_bounds = array<i64: 1, 1, 256>}, {transform_indices = @transform_1, window_bounds = array<i64: 1, 1, 256>}, {transform_indices = @transform_2, window_bounds = array<i64: 1, 256, 1>}, {transform_indices = @transform_3, window_bounds = array<i64: 1, 256, 1>}, {transform_indices = @transform_4, window_bounds = array<i64: 1, 1, 1>}]} {
    %c0 = arith.constant 0 : index
    %c0_0 = arith.constant 0 : index
    %c0_1 = arith.constant 0 : index
    %0 = vector.load %arg1[%c0, %c0_0, %c0_1] : memref<1x1x256xf32, #tpu.memory_space<vmem>>, vector<1x1x256xf32>
    %1 = vector.shape_cast %0 : vector<1x1x256xf32> to vector<1x256xf32>
    %c0_2 = arith.constant 0 : index
    %c0_3 = arith.constant 0 : index
    %c0_4 = arith.constant 0 : index
    %2 = vector.load %arg2[%c0_2, %c0_3, %c0_4] : memref<1x1x256xf32, #tpu.memory_space<vmem>>, vector<1x1x256xf32>
    %3 = vector.shape_cast %2 : vector<1x1x256xf32> to vector<1x256xf32>
    %cst = arith.constant 2.000000e+00 : f32
    %4 = vector.broadcast %cst : f32 to vector<1x256xf32>
    %5 = arith.mulf %4, %3 : vector<1x256xf32>
    %cst_5 = arith.constant 1.000000e+00 : f32
    %6 = vector.broadcast %cst_5 : f32 to vector<1x256xf32>
    %7 = arith.subf %5, %6 : vector<1x256xf32>
    %8 = arith.mulf %1, %7 : vector<1x256xf32>
    %cst_6 = arith.constant 1.000000e+00 : f32
    %9 = vector.broadcast %cst_6 : f32 to vector<1x256xf32>
    %10 = arith.subf %9, %8 : vector<1x256xf32>
    %11 = vector.shape_cast %3 : vector<1x256xf32> to vector<1x1x256xf32>
    %cst_7 = arith.constant dense<0.000000e+00> : vector<1xf32>
    %12 = vector.multi_reduction <add>, %11, %cst_7 [1, 2] : vector<1x1x256xf32> to vector<1xf32>
    %13 = vector.shape_cast %12 : vector<1xf32> to vector<1x1x1xf32>
    %14 = vector.extract %13[0, 0, 0] : f32 from vector<1x1x1xf32>
    %15 = vector.broadcast %14 : f32 to vector<1x1xf32>
    %16 = tpu.iota {dimensions = array<i32: 1>} : vector<1x256xi32>
    %cst_8 = arith.constant 0.000000e+00 : f32
    %17 = vector.broadcast %cst_8 : f32 to vector<2x256xf32>
    %c0_i32 = arith.constant 0 : i32
    %c256_i32 = arith.constant 256 : i32
    %18 = arith.muli %c0_i32, %c256_i32 : i32
    %19 = tpu.assume_multiple %18, 256 : i32
    %c0_9 = arith.constant 0 : index
    %20 = arith.index_cast %19 : i32 to index
    %c0_10 = arith.constant 0 : index
    %21 = vector.load %arg3[%c0_9, %20, %c0_10] : memref<1x256x1xf32, #tpu.memory_space<vmem>>, vector<1x256x1xf32>
    %22 = vector.shape_cast %21 : vector<1x256x1xf32> to vector<256x1xf32>
    %c0_11 = arith.constant 0 : index
    %23 = arith.index_cast %19 : i32 to index
    %c0_12 = arith.constant 0 : index
    %24 = vector.load %arg4[%c0_11, %23, %c0_12] : memref<1x256x1xf32, #tpu.memory_space<vmem>>, vector<1x256x1xf32>
    %25 = vector.shape_cast %24 : vector<1x256x1xf32> to vector<256x1xf32>
    %cst_13 = arith.constant 2.000000e+00 : f32
    %26 = vector.broadcast %cst_13 : f32 to vector<256x1xf32>
    %27 = arith.mulf %26, %25 : vector<256x1xf32>
    %cst_14 = arith.constant 1.000000e+00 : f32
    %28 = vector.broadcast %cst_14 : f32 to vector<256x1xf32>
    %29 = arith.subf %27, %28 : vector<256x1xf32>
    %30 = arith.mulf %22, %29 : vector<256x1xf32>
    %cst_15 = arith.constant 1.000000e+00 : f32
    %31 = vector.broadcast %cst_15 : f32 to vector<256x1xf32>
    %32 = arith.subf %31, %30 : vector<256x1xf32>
    %33 = tpu.iota {dimensions = array<i32: 0>} : vector<256x1xi32>
    %34 = vector.broadcast %19 : i32 to vector<256x1xi32>
    %35 = arith.addi %34, %33 : vector<256x1xi32>
    %36 = vector.broadcast %32 : vector<256x1xf32> to vector<256x256xf32>
    %37 = vector.broadcast %10 : vector<1x256xf32> to vector<256x256xf32>
    %38 = arith.cmpf ogt, %36, %37 : vector<256x256xf32>
    %39 = vector.broadcast %32 : vector<256x1xf32> to vector<256x256xf32>
    %40 = vector.broadcast %10 : vector<1x256xf32> to vector<256x256xf32>
    %41 = arith.cmpf oeq, %39, %40 : vector<256x256xf32>
    %42 = vector.broadcast %35 : vector<256x1xi32> to vector<256x256xi32>
    %43 = vector.broadcast %16 : vector<1x256xi32> to vector<256x256xi32>
    %44 = arith.cmpi slt, %42, %43 : vector<256x256xi32>
    %45 = arith.andi %41, %44 : vector<256x256xi1>
    %46 = arith.ori %38, %45 : vector<256x256xi1>
    %cst_16 = arith.constant 1.000000e+00 : f32
    %cst_17 = arith.constant 0.000000e+00 : f32
    %47 = vector.broadcast %cst_16 : f32 to vector<256x256xf32>
    %48 = vector.broadcast %cst_17 : f32 to vector<256x256xf32>
    %49 = arith.select %46, %47, %48 : vector<256x256xi1>, vector<256x256xf32>
    %c0_18 = arith.constant 0 : index
    %c0_19 = arith.constant 0 : index
    %50 = arith.index_cast %19 : i32 to index
    %51 = vector.load %arg2[%c0_18, %c0_19, %50] : memref<1x1x256xf32, #tpu.memory_space<vmem>>, vector<1x1x256xf32>
    %52 = vector.shape_cast %51 : vector<1x1x256xf32> to vector<1x256xf32>
    %53 = tpu.iota {dimensions = array<i32: 0>} : vector<2x256xi32>
    %c0_i32_20 = arith.constant 0 : i32
    %54 = vector.broadcast %c0_i32_20 : i32 to vector<2x256xi32>
    %55 = arith.cmpi eq, %53, %54 : vector<2x256xi32>
    %56 = vector.shape_cast %52 : vector<1x256xf32> to vector<1x256xf32>
    %57 = vector.broadcast %56 : vector<1x256xf32> to vector<2x256xf32>
    %cst_21 = arith.constant 1.000000e+00 : f32
    %58 = vector.broadcast %cst_21 : f32 to vector<2x256xf32>
    %59 = arith.select %55, %58, %57 : vector<2x256xi1>, vector<2x256xf32>
    %cst_22 = arith.constant dense<0.000000e+00> : vector<2x256xf32>
    %60 = tpu.matmul %59, %49, %cst_22 {dimension_numbers = #tpu.dot_dimension_numbers<[1], [0], [0], [1], [0, 0, 1, 1], [], []>} : vector<2x256xf32>, vector<256x256xf32>, vector<2x256xf32> -> vector<2x256xf32>
    %61 = arith.addf %17, %60 : vector<2x256xf32>
    %c1_i32 = arith.constant 1 : i32
    %62 = vector.extract_strided_slice %61 {offsets = [0, 0], sizes = [1, 256], strides = [1, 1]} : vector<2x256xf32> to vector<1x256xf32>
    %63 = vector.extract_strided_slice %61 {offsets = [1, 0], sizes = [1, 256], strides = [1, 1]} : vector<2x256xf32> to vector<1x256xf32>
    %64 = arith.addf %63, %3 : vector<1x256xf32>
    %cst_23 = arith.constant 1.000000e+00 : f32
    %65 = vector.broadcast %cst_23 : f32 to vector<1x256xf32>
    %66 = arith.addf %62, %65 : vector<1x256xf32>
    %67 = vector.broadcast %15 : vector<1x1xf32> to vector<1x256xf32>
    %68 = arith.addf %67, %66 : vector<1x256xf32>
    %69 = arith.subf %68, %64 : vector<1x256xf32>
    %70 = vector.broadcast %15 : vector<1x1xf32> to vector<1x256xf32>
    %71 = arith.subf %70, %64 : vector<1x256xf32>
    %72 = arith.divf %71, %69 : vector<1x256xf32>
    %cst_24 = arith.constant 1.000000e+00 : f32
    %73 = vector.broadcast %cst_24 : f32 to vector<1x256xf32>
    %74 = arith.subf %73, %72 : vector<1x256xf32>
    %cst_25 = arith.constant 5.000000e-01 : f32
    %75 = vector.broadcast %cst_25 : f32 to vector<1x256xf32>
    %76 = arith.cmpf olt, %62, %75 : vector<1x256xf32>
    %77 = vector.broadcast %15 : vector<1x1xf32> to vector<1x256xf32>
    %78 = arith.addf %77, %62 : vector<1x256xf32>
    %79 = arith.subf %78, %63 : vector<1x256xf32>
    %cst_26 = arith.constant 1.000000e+00 : f32
    %80 = vector.broadcast %cst_26 : f32 to vector<1x256xf32>
    %81 = arith.select %76, %80, %79 : vector<1x256xi1>, vector<1x256xf32>
    %82 = vector.broadcast %15 : vector<1x1xf32> to vector<1x256xf32>
    %83 = arith.subf %82, %63 : vector<1x256xf32>
    %84 = arith.divf %83, %81 : vector<1x256xf32>
    %cst_27 = arith.constant 1.000000e+00 : f32
    %85 = vector.broadcast %cst_27 : f32 to vector<1x256xf32>
    %86 = arith.subf %85, %84 : vector<1x256xf32>
    %cst_28 = arith.constant 0.000000e+00 : f32
    %87 = vector.broadcast %cst_28 : f32 to vector<1x256xf32>
    %88 = arith.select %76, %87, %86 : vector<1x256xi1>, vector<1x256xf32>
    %89 = arith.subf %74, %88 : vector<1x256xf32>
    %cst_29 = arith.constant 0.000000e+00 : f32
    %90 = vector.broadcast %cst_29 : f32 to vector<1x256xf32>
    %91 = arith.maximumf %10, %90 : vector<1x256xf32>
    %92 = arith.mulf %91, %89 : vector<1x256xf32>
    %93 = vector.shape_cast %92 : vector<1x256xf32> to vector<1x1x256xf32>
    %cst_30 = arith.constant dense<0.000000e+00> : vector<1xf32>
    %94 = vector.multi_reduction <add>, %93, %cst_30 [1, 2] : vector<1x1x256xf32> to vector<1xf32>
    %95 = vector.shape_cast %94 : vector<1xf32> to vector<1x1x1xf32>
    %96 = vector.extract %95[0, 0, 0] : f32 from vector<1x1x1xf32>
    %97 = vector.broadcast %96 : f32 to vector<1x1xf32>
    %c0_31 = arith.constant 0 : index
    %c0_32 = arith.constant 0 : index
    %c0_33 = arith.constant 0 : index
    %98 = vector.load %arg5[%c0_31, %c0_32, %c0_33] : memref<1x1x1xf32, #tpu.memory_space<vmem>>, vector<1x1x1xf32>
    %99 = vector.shape_cast %98 : vector<1x1x1xf32> to vector<1x1xf32>
    %100 = vector.shape_cast %97 : vector<1x1xf32> to vector<1x1x1xf32>
    tpu.vector_store %arg5[%c0_31, %c0_32, %c0_33], %100 {strides = array<i32>} : memref<1x1x1xf32, #tpu.memory_space<vmem>>, vector<1x1x1xf32>,
    return
  }
  func.func @transform_0(%arg0: i32) -> (i32, i32, i32) {
    %c0_i32 = arith.constant 0 : i32
    %c0_i32_0 = arith.constant 0 : i32
    %c0_i32_1 = arith.constant 0 : i32
    return %arg0, %c0_i32, %c0_i32_0 : i32, i32, i32
  }
  func.func @transform_1(%arg0: i32) -> (i32, i32, i32) {
    %c0_i32 = arith.constant 0 : i32
    %c0_i32_0 = arith.constant 0 : i32
    %c0_i32_1 = arith.constant 0 : i32
    return %arg0, %c0_i32, %c0_i32_0 : i32, i32, i32
  }
  func.func @transform_2(%arg0: i32) -> (i32, i32, i32) {
    %c0_i32 = arith.constant 0 : i32
    %c0_i32_0 = arith.constant 0 : i32
    %c0_i32_1 = arith.constant 0 : i32
    return %arg0, %c0_i32, %c0_i32_0 : i32, i32, i32
  }
  func.func @transform_3(%arg0: i32) -> (i32, i32, i32) {
    %c0_i32 = arith.constant 0 : i32
    %c0_i32_0 = arith.constant 0 : i32
    %c0_i32_1 = arith.constant 0 : i32
    return %arg0, %c0_i32, %c0_i32_0 : i32, i32, i32
  }
  func.func @transform_4(%arg0: i32) -> (i32, i32, i32) {
    %c0_i32 = arith.constant 0 : i32
    %c0_i32_0 = arith.constant 0 : i32
    %c0_i32_1 = arith.constant 0 : i32
    return %arg0, %c0_i32, %c0_i32_0 : i32, i32, i32
  }
}

</mosaic_0001>

<bundles_post_ra>
// kernel: tpu_custom_call.1
= control target key start
LH: loop header
LB: loop body
LE: loop exit
PB: predicated region body
PF: predicated region fallthrough
CT: control target
= control target key end

     0   :  { %s1620_s15 = smov 0   ;;  %s2151_s0 = inlined_call_operand.vmem [shape: f32[2,1,256], index: 0, kind: input, shape index: {}]   ;;  %s2152_s1 = inlined_call_operand.vmem [shape: f32[2,1,256], index: 1, kind: input, shape index: {}]   ;;  %s2153_s2 = inlined_call_operand.vmem [shape: f32[2,256,1], index: 2, kind: input, shape index: {}]   ;;  %s2154_s3 = inlined_call_operand.vmem [shape: f32[2,256,1], index: 3, kind: input, shape index: {}]   ;;  %s2155_s4 = inlined_call_operand.vmem [shape: f32[2,1,1], index: 4, kind: output, shape index: {}]  }
   0x1 LB: > { %s1383_s16 = sadd.s32 4294967295, %s1590_s15   ;;  %p1387_p0 = scmp.ge.s32.totalorder %s1590_s15, 1  ;;  %s1590_s15 = sphi %s1620_s15, %s14_s15  }
   0x2   : > { %p190_p1 = scmp.lt.s32.totalorder %s1590_s15, 3 }
   0x4   : > { %p191_p2 = pnand %p1387_p0, %p190_p1 }
   0x5   : > { %p227_p3 = scmp.lt.s32.totalorder (!%p191_p2), %s1383_s16, 1  ;;  %v1592_v0 = vmov (!%p191_p2), 0   ;;  %vm2156_vm1 = vcmask (!%p191_p2), 1040384  }
   0x6   : > { %194 = sbr.rel (%p191_p2) target bundleno = 733 (0x2dd), region = 36  ;;  %1575 = vset.pattern.permute.xlu1 (!%p191_p2), %v1592_v0  ;;  %1574 = vset.pattern.permute.xlu0 (!%p191_p2), %v1592_v0 }
   0xd   : > { %s2205_s16 = smov (!%p227_p3, %s1383_s16), 1 }
   0xe   : > { %s1493_s17 = sshll.u32 %s2205_s16, 8  ;;  %s1388_s24 = sshll.u32 %s2205_s16, 1 }
   0xf   : > { %s1634_s20 = scalar_lea.vmem %s2153_s2, %s1493_s17  ;;  %s1639_s23 = scalar_lea.vmem %s2154_s3, %s1493_s17 }
  0x10   : > { %v315_v1 = vld [vmem:[%s1639_s23 + $0x10] sm:$0xff]  ;;  %v313_v3 = vld [vmem:[%s1639_s23] sm:$0xff]  ;;  %v316_v6 = vld [vmem:[%s1639_s23 + $0x18] sm:$0xff]  ;;  %s234_s27 = scalar_lea.vmem %s2152_s1, %s1388_s24  ;;  %s230_s30 = scalar_lea.vmem %s2151_s0, %s1388_s24 }
  0x11   : > { %v347_v2 = vmul.f32 2.0, %v315_v1  ;;  %v283_v4 = vld [vmem:[%s1634_s20 + $0x10] sm:$0xff]  ;;  %v345_v5 = vmul.f32 2.0, %v313_v3  ;;  %v281_v8 = vld [vmem:[%s1634_s20] sm:$0xff]  ;;  %v348_v9 = vmul.f32 2.0, %v316_v6  ;;  %v314_v10 = vld [vmem:[%s1639_s23 + $0x8] sm:$0xff]  ;;  %s247_s8 = scalar_lea.vmem %s2155_s4, %s2205_s16 }
  0x12   : > { %v318_v11 = vld [vmem:[%s1639_s23 + $0x28] sm:$0xff]  ;;  %v284_v13 = vld [vmem:[%s1634_s20 + $0x18] sm:$0xff]  ;;  %v346_v14 = vmul.f32 2.0, %v314_v10  ;;  %v317_v16 = vld [vmem:[%s1639_s23 + $0x20] sm:$0xff] }
  0x13   : > { %v1397_v7 = vadd.f32 -1.0, %v347_v2  ;;  %v1395_v12 = vadd.f32 -1.0, %v345_v5  ;;  %v350_v15 = vmul.f32 2.0, %v318_v11  ;;  %v1398_v18 = vadd.f32 -1.0, %v348_v9  ;;  %v282_v19 = vld [vmem:[%s1634_s20 + $0x8] sm:$0xff]  ;;  %v320_v21 = vld [vmem:[%s1639_s23 + $0x38] sm:$0xff] }
  0x14   : > { %v349_v20 = vmul.f32 2.0, %v317_v16  ;;  %v1396_v23 = vadd.f32 -1.0, %v346_v14  ;;  %v286_v24 = vld [vmem:[%s1634_s20 + $0x28] sm:$0xff]  ;;  %v319_v26 = vld [vmem:[%s1639_s23 + $0x30] sm:$0xff]  ;;  %v285_v29 = vld [vmem:[%s1634_s20 + $0x20] sm:$0xff]  ;;  %v352_v31 = vmul.f32 2.0, %v320_v21 }
  0x15   : > { %v411_v17 = vmul.f32 %v1397_v7, %v283_v4  ;;  %v409_v22 = vmul.f32 %v1395_v12, %v281_v8  ;;  %v1400_v25 = vadd.f32 -1.0, %v350_v15  ;;  %v412_v28 = vmul.f32 %v1398_v18, %v284_v13  ;;  %v322_v34 = vld [vmem:[%s1639_s23 + $0x48] sm:$0xff]  ;;  %v321_v39 = vld [vmem:[%s1639_s23 + $0x40] sm:$0xff]  ;;  %v288_v42 = vld [vmem:[%s1634_s20 + $0x38] sm:$0xff] }
  0x16   : > { %v1399_v30 = vadd.f32 -1.0, %v349_v20  ;;  %v410_v33 = vmul.f32 %v1396_v23, %v282_v19  ;;  %v1402_v37 = vadd.f32 -1.0, %v352_v31  ;;  %v351_v38 = vmul.f32 2.0, %v319_v26  ;;  %v324_v43 = vld [vmem:[%s1639_s23 + $0x58] sm:$0xff]  ;;  %v287_v44 = vld [vmem:[%s1634_s20 + $0x30] sm:$0xff]  ;;  %v290_v55 = vld [vmem:[%s1634_s20 + $0x48] sm:$0xff] }
  0x17   : > { %v443_v27 = vsub.f32 1.0, %v411_v17  ;;  %v441_v32 = vsub.f32 1.0, %v409_v22  ;;  %v444_v35 = vsub.f32 1.0, %v412_v28  ;;  %v414_v36 = vmul.f32 %v1400_v25, %v286_v24  ;;  %v323_v47 = vld [vmem:[%s1639_s23 + $0x50] sm:$0xff]  ;;  %v326_v58 = vld [vmem:[%s1639_s23 + $0x68] sm:$0xff]  ;;  %v289_v59 = vld [vmem:[%s1634_s20 + $0x40] sm:$0xff] }
  0x18   : > { %v442_v40 = vsub.f32 1.0, %v410_v33  ;;  %v413_v41 = vmul.f32 %v1399_v30, %v285_v29  ;;  %v1401_v45 = vadd.f32 -1.0, %v351_v38  ;;  %v354_v46 = vmul.f32 2.0, %v322_v34  ;;  %v325_v60 = vld [vmem:[%s1639_s23 + $0x60] sm:$0xff]  ;;  %v292_v3 = vld [vmem:[%s1634_s20 + $0x58] sm:$0xff]  ;;  %v291_v7 = vld [vmem:[%s1634_s20 + $0x50] sm:$0xff] }
  0x19   : > { %551 = vperm.xlu1 %1575, %v443_v27   ;;  %541 = vperm.xlu0 %1574, %v441_v32   ;;  %v353_v48 = vmul.f32 2.0, %v321_v39  ;;  %v446_v49 = vsub.f32 1.0, %v414_v36  ;;  %v416_v50 = vmul.f32 %v1402_v37, %v288_v42  ;;  %v356_v52 = vmul.f32 2.0, %v324_v43  ;;  %v328_v6 = vld [vmem:[%s1639_s23 + $0x78] sm:$0xff]  ;;  %v327_v8 = vld [vmem:[%s1639_s23 + $0x70] sm:$0xff]  ;;  %v294_v15 = vld [vmem:[%s1634_s20 + $0x68] sm:$0xff] }
  0x1a   : > { %v1404_v51 = vadd.f32 -1.0, %v354_v46  ;;  %v445_v53 = vsub.f32 1.0, %v413_v41  ;;  %v415_v54 = vmul.f32 %v1401_v45, %v287_v44  ;;  %v355_v57 = vmul.f32 2.0, %v323_v47  ;;  %v330_v18 = vld [vmem:[%s1639_s23 + $0x88] sm:$0xff]  ;;  %v293_v19 = vld [vmem:[%s1634_s20 + $0x60] sm:$0xff]  ;;  %v296_v27 = vld [vmem:[%s1634_s20 + $0x78] sm:$0xff] }
  0x1b   : > { %v1403_v56 = vadd.f32 -1.0, %v353_v48  ;;  %v448_v61 = vsub.f32 1.0, %v416_v50  ;;  %v1406_v63 = vadd.f32 -1.0, %v356_v52  ;;  %v358_v0 = vmul.f32 2.0, %v326_v58  ;;  %v329_v20 = vld [vmem:[%s1639_s23 + $0x80] sm:$0xff]  ;;  %v332_v30 = vld [vmem:[%s1639_s23 + $0x98] sm:$0xff] }
  0x1c   : > { %v418_v62 = vmul.f32 %v1404_v51, %v290_v55  ;;  %v447_v1 = vsub.f32 1.0, %v415_v54  ;;  %v1405_v4 = vadd.f32 -1.0, %v355_v57  ;;  %v357_v5 = vmul.f32 2.0, %v325_v60  ;;  %v295_v31 = vld [vmem:[%s1634_s20 + $0x70] sm:$0xff]  ;;  %v298_v39 = vld [vmem:[%s1634_s20 + $0x88] sm:$0xff]  ;;  %v297_v43 = vld [vmem:[%s1634_s20 + $0x80] sm:$0xff] }
  0x1d   : > { %556 = vperm.xlu1 %1575, %v444_v35   ;;  %546 = vperm.xlu0 %1574, %v442_v40   ;;  %v417_v2 = vmul.f32 %v1403_v56, %v289_v59  ;;  %v420_v10 = vmul.f32 %v1406_v63, %v292_v3  ;;  %v1408_v11 = vadd.f32 -1.0, %v358_v0  ;;  %v360_v12 = vmul.f32 2.0, %v328_v6  ;;  %v331_v32 = vld [vmem:[%s1639_s23 + $0x90] sm:$0xff]  ;;  %v334_v42 = vld [vmem:[%s1639_s23 + $0xa8] sm:$0xff]  ;;  %v333_v44 = vld [vmem:[%s1639_s23 + $0xa0] sm:$0xff] }
  0x1e   : > { %v450_v9 = vsub.f32 1.0, %v418_v62  ;;  %v419_v14 = vmul.f32 %v1405_v4, %v291_v7  ;;  %v1407_v16 = vadd.f32 -1.0, %v357_v5  ;;  %v359_v17 = vmul.f32 2.0, %v327_v8  ;;  %v300_v51 = vld [vmem:[%s1634_s20 + $0x98] sm:$0xff]  ;;  %v299_v55 = vld [vmem:[%s1634_s20 + $0x90] sm:$0xff]  ;;  %v302_v63 = vld [vmem:[%s1634_s20 + $0xa8] sm:$0xff] }
  0x1f   : > { %v449_v13 = vsub.f32 1.0, %v417_v2  ;;  %v452_v21 = vsub.f32 1.0, %v420_v10  ;;  %v422_v22 = vmul.f32 %v1408_v11, %v294_v15  ;;  %v1410_v23 = vadd.f32 -1.0, %v360_v12  ;;  %v336_v54 = vld [vmem:[%s1639_s23 + $0xb8] sm:$0xff]  ;;  %v335_v56 = vld [vmem:[%s1639_s23 + $0xb0] sm:$0xff]  ;;  %v338_v2 = vld [vmem:[%s1639_s23 + $0xc8] sm:$0xff] }
  0x20   : > { %v362_v24 = vmul.f32 2.0, %v330_v18  ;;  %v451_v25 = vsub.f32 1.0, %v419_v14  ;;  %v421_v26 = vmul.f32 %v1407_v16, %v293_v19  ;;  %v1409_v28 = vadd.f32 -1.0, %v359_v17  ;;  %v301_v3 = vld [vmem:[%s1634_s20 + $0xa0] sm:$0xff]  ;;  %v304_v11 = vld [vmem:[%s1634_s20 + $0xb8] sm:$0xff]  ;;  %v303_v15 = vld [vmem:[%s1634_s20 + $0xb0] sm:$0xff] }
  0x21   : > { %566 = vperm.xlu1 %1575, %v446_v49   ;;  %561 = vperm.xlu0 %1574, %v445_v53   ;;  %v361_v29 = vmul.f32 2.0, %v329_v20  ;;  %v454_v33 = vsub.f32 1.0, %v422_v22  ;;  %v424_v34 = vmul.f32 %v1410_v23, %v296_v27  ;;  %v364_v36 = vmul.f32 2.0, %v332_v30  ;;  %v337_v4 = vld [vmem:[%s1639_s23 + $0xc0] sm:$0xff]  ;;  %v340_v14 = vld [vmem:[%s1639_s23 + $0xd8] sm:$0xff]  ;;  %v339_v16 = vld [vmem:[%s1639_s23 + $0xd0] sm:$0xff] }
  0x22   : > { %v1412_v35 = vadd.f32 -1.0, %v362_v24  ;;  %v453_v37 = vsub.f32 1.0, %v421_v26  ;;  %v423_v38 = vmul.f32 %v1409_v28, %v295_v31  ;;  %v363_v41 = vmul.f32 2.0, %v331_v32  ;;  %v306_v23 = vld [vmem:[%s1634_s20 + $0xc8] sm:$0xff]  ;;  %v305_v27 = vld [vmem:[%s1634_s20 + $0xc0] sm:$0xff] }
  0x23   : > { %v1411_v40 = vadd.f32 -1.0, %v361_v29  ;;  %v456_v45 = vsub.f32 1.0, %v424_v34  ;;  %v1414_v47 = vadd.f32 -1.0, %v364_v36  ;;  %v366_v48 = vmul.f32 2.0, %v334_v42  ;;  %v342_v26 = vld [vmem:[%s1639_s23 + $0xe8] sm:$0xff]  ;;  %v341_v28 = vld [vmem:[%s1639_s23 + $0xe0] sm:$0xff] }
  0x24   : > { %v426_v46 = vmul.f32 %v1412_v35, %v298_v39  ;;  %v455_v49 = vsub.f32 1.0, %v423_v38  ;;  %v1413_v52 = vadd.f32 -1.0, %v363_v41  ;;  %v365_v53 = vmul.f32 2.0, %v333_v44  ;;  %v308_v35 = vld [vmem:[%s1634_s20 + $0xd8] sm:$0xff]  ;;  %v307_v39 = vld [vmem:[%s1634_s20 + $0xd0] sm:$0xff] }
  0x25   : > { %576 = vperm.xlu1 %1575, %v448_v61   ;;  %571 = vperm.xlu0 %1574, %v447_v1   ;;  %v425_v50 = vmul.f32 %v1411_v40, %v297_v43  ;;  %v428_v58 = vmul.f32 %v1414_v47, %v300_v51  ;;  %v1416_v59 = vadd.f32 -1.0, %v366_v48  ;;  %v368_v60 = vmul.f32 2.0, %v336_v54  ;;  %v344_v38 = vld [vmem:[%s1639_s23 + $0xf8] sm:$0xff]  ;;  %v343_v40 = vld [vmem:[%s1639_s23 + $0xf0] sm:$0xff]  ;;  %v310_v47 = vld [vmem:[%s1634_s20 + $0xe8] sm:$0xff] }
  0x26   : > { %v458_v57 = vsub.f32 1.0, %v426_v46  ;;  %v427_v62 = vmul.f32 %v1413_v52, %v299_v55  ;;  %v1415_v0 = vadd.f32 -1.0, %v365_v53  ;;  %v367_v1 = vmul.f32 2.0, %v335_v56  ;;  %v312_v56 = vld [vmem:[%s1634_s20 + $0xf8] sm:$0xff] }
  0x27   : > { %v457_v61 = vsub.f32 1.0, %v425_v50  ;;  %v460_v5 = vsub.f32 1.0, %v428_v58  ;;  %v430_v6 = vmul.f32 %v1416_v59, %v302_v63  ;;  %v1418_v7 = vadd.f32 -1.0, %v368_v60  ;;  %v309_v50 = vld [vmem:[%s1634_s20 + $0xe0] sm:$0xff]  ;;  %v311_v58 = vld [vmem:[%s1634_s20 + $0xf0] sm:$0xff] }
  0x28   : > { %v370_v8 = vmul.f32 2.0, %v338_v2  ;;  %v429_v10 = vmul.f32 %v1415_v0, %v301_v3  ;;  %v1417_v12 = vadd.f32 -1.0, %v367_v1  ;;  %v372_v20 = vmul.f32 2.0, %v340_v14  ;;  %v249_v2 = vld [vmem:[%s234_s27] sm:$0x3] }
  0x29   : > { %586 = vperm.xlu1 %1575, %v450_v9   ;;  %581 = vperm.xlu0 %1574, %v449_v13   ;;  %v459_v9 = vsub.f32 1.0, %v427_v62  ;;  %v369_v13 = vmul.f32 2.0, %v337_v4  ;;  %v462_v17 = vsub.f32 1.0, %v430_v6  ;;  %v432_v18 = vmul.f32 %v1418_v7, %v304_v11 }
  0x2a   : > { %v1420_v19 = vadd.f32 -1.0, %v370_v8  ;;  %v431_v22 = vmul.f32 %v1417_v12, %v303_v15  ;;  %v1422_v31 = vadd.f32 -1.0, %v372_v20  ;;  %v374_v32 = vmul.f32 2.0, %v342_v26  ;;  %v1094_v8 = vld [vmem:[%s234_s27] sm:$0x3] }
  0x2b   : > { %v1419_v24 = vadd.f32 -1.0, %v369_v13  ;;  %v464_v29 = vsub.f32 1.0, %v432_v18  ;;  %v376_v44 = vmul.f32 2.0, %v344_v38  ;;  %v255_v1 = vlaneseq }
  0x2c   : > { %v434_v30 = vmul.f32 %v1420_v19, %v306_v23  ;;  %v436_v42 = vmul.f32 %v1422_v31, %v308_v35  ;;  %v1424_v43 = vadd.f32 -1.0, %v374_v32  ;;  %v250_v4 = vmul.f32 2.0, %v249_v2 }
  0x2d   : > { %596 = vperm.xlu1 %1575, %v452_v21   ;;  %591 = vperm.xlu0 %1574, %v451_v25   ;;  %v461_v21 = vsub.f32 1.0, %v429_v10  ;;  %v371_v25 = vmul.f32 2.0, %v339_v16  ;;  %v433_v34 = vmul.f32 %v1419_v24, %v305_v27  ;;  %v1426_v53 = vadd.f32 -1.0, %v376_v44 }
  0x2e   : > { %v466_v41 = vsub.f32 1.0, %v434_v30  ;;  %v468_v51 = vsub.f32 1.0, %v436_v42  ;;  %v438_v52 = vmul.f32 %v1424_v43, %v310_v47  ;;  %v1709_v3 = vshrl.u32 %v255_v1, 7 }
  0x2f   : > { %v1421_v36 = vadd.f32 -1.0, %v371_v25  ;;  %v440_v60 = vmul.f32 %v1426_v53, %v312_v56  ;;  %v1394_v7 = vadd.f32 -1.0, %v250_v4  ;;  %v1593_v35 = vmov 1.0|1.0  }
  0x30   : > { %v470_v59 = vsub.f32 1.0, %v438_v52  ;;  %v1718_v6 = vsub.s32 1, %v1709_v3  ;;  %vm1095_vm0 = vcmp.eq.s32.totalorder %v1709_v3, 0  ;;  %v475_v26 = vadd.s32 8, %v1709_v3 }
  0x31   : > { %606 = vperm.xlu1 %1575, %v454_v33   ;;  %601 = vperm.xlu0 %1574, %v453_v37   ;;  %v463_v33 = vsub.f32 1.0, %v431_v22  ;;  %v373_v37 = vmul.f32 2.0, %v341_v28  ;;  %v435_v46 = vmul.f32 %v1421_v36, %v307_v39  ;;  %v472_v63 = vsub.f32 1.0, %v440_v60 }
  0x32   : > { %v1104_v10 = vrot.slane %v1094_v8, %v1718_v6  ;;  %v1729_v15 = vrot.slane %v249_v2, %v1718_v6  ;;  %v476_v32 = vadd.s32 16, %v1709_v3  ;;  %v478_v38 = vadd.s32 32, %v1709_v3 }
  0x33   : > { %v1423_v48 = vadd.f32 -1.0, %v373_v37  ;;  %v467_v54 = vsub.f32 1.0, %v435_v46  ;;  %v479_v39 = vadd.s32 40, %v1709_v3  ;;  %v480_v42 = vadd.s32 48, %v1709_v3 }
  0x34   : > { %v1108_v12 = vsel %vm1095_vm0, 1.0, %v1104_v10  ;;  %v267_v18 = vsel %vm2156_vm1, %v1729_v15, 0.0  ;;  %v481_v43 = vadd.s32 56, %v1709_v3  ;;  %v482_v46 = vadd.s32 64, %v1709_v3 }
  0x35   : > { %616 = vperm.xlu1 %1575, %v456_v45   ;;  %611 = vperm.xlu0 %1574, %v455_v49   ;;  %v465_v45 = vsub.f32 1.0, %v433_v34  ;;  %v375_v49 = vmul.f32 2.0, %v343_v40  ;;  %v437_v55 = vmul.f32 %v1423_v48, %v309_v50  ;;  %v477_v34 = vadd.s32 24, %v1709_v3 }
  0x36   : > { %1173 = vmatprep.mubr.f32.mxu0 %v1108_v12  ;;  %v483_v47 = vadd.s32 72, %v1709_v3  ;;  %v484_v50 = vadd.s32 80, %v1709_v3  ;;  %v486_v56 = vadd.s32 96, %v1709_v3  ;;  %v489_v4 = vadd.s32 120, %v1709_v3 }
  0x37   : > { %v2169_v10 = vmov 0  ;;  %v495_v12 = vadd.s32 168, %v1709_v3  ;;  %v499_v28 = vadd.s32 200, %v1709_v3  ;;  %v498_v31 = vadd.s32 192, %v1709_v3 }
  0x39   : > { %626 = vperm.xlu1 %1575, %v458_v57   ;;  %621 = vperm.xlu0 %1574, %v457_v61   ;;  %v1425_v57 = vadd.f32 -1.0, %v375_v49  ;;  %v469_v61 = vsub.f32 1.0, %v437_v55 }
  0x3b   : > { %v439_v62 = vmul.f32 %v1425_v57, %v311_v58  ;;  %v487_v57 = vadd.s32 104, %v1709_v3 }
  0x3d   : > { %636 = vperm.xlu1 %1575, %v460_v5   ;;  %631 = vperm.xlu0 %1574, %v459_v9   ;;  %v471_v0 = vsub.f32 1.0, %v439_v62  ;;  %v1715_v5 = vsub.s32 0, %v1709_v3  ;;  %v248_v9 = vld [vmem:[%s230_s30] sm:$0x3]  ;;  %v490_v62 = vadd.s32 128, %v1709_v3 }
  0x3e   : > { %v252_v16 = vmul.f32 %v1394_v7, %v248_v9 }
  0x3f   : > { %v1100_v11 = vrot.slane %v1094_v8, %v1715_v5  ;;  %v1726_v14 = vrot.slane %v249_v2, %v1715_v5  ;;  %v2165_v8 = vmov 0 }
  0x40   : > { %v1735_v20 = vsub.f32 1.0, %v252_v16 }
  0x41   : > { %646 = vperm.xlu1 %1575, %v462_v17   ;;  %641 = vperm.xlu0 %1574, %v461_v21   ;;  %v1723_v13 = vsel %vm1095_vm0, 1.0, %v1100_v11  ;;  %v266_v17 = vsel %vm2156_vm1, %v1726_v14, 0.0  ;;  %v1737_v21 = vand.u32 127, %v255_v1  ;;  %v493_v1 = vadd.s32 152, %v1709_v3 }
  0x42   : > { %v268_v19 = vadd.f32 %v267_v18, %v266_v17  ;;  %v1741_v22 = vrot.slane %v1735_v20, %v1715_v5  ;;  %v1745_v23 = vrot.slane %v1735_v20, %v1718_v6  ;;  %v494_v17 = vadd.s32 160, %v1709_v3 }
  0x43   : > { %vm838_vm2 = vcmp.lt.s32.totalorder %v1709_v3, %v1737_v21  ;;  %v1877_v60 = vadd.s32 128, %v1737_v21 }
  0x45   : > { %656 = vperm.xlu1 %1575, %v464_v29   ;;  %651 = vperm.xlu0 %1574, %v463_v33  }
  0x49   : > { %666 = vperm.xlu1 %1575, %v466_v41   ;;  %661 = vperm.xlu0 %1574, %v465_v45  }
  0x4d   : > { %676 = vperm.xlu1 %1575, %v468_v51   ;;  %671 = vperm.xlu0 %1574, %v467_v54   ;;  %v485_v51 = vadd.s32 88, %v1709_v3 }
  0x51   : > { %686 = vperm.xlu1 %1575, %v470_v59   ;;  %681 = vperm.xlu0 %1574, %v469_v61   ;;  %v491_v61 = vadd.s32 136, %v1709_v3 }
  0x55   : > { %696 = vperm.xlu1 %1575, %v472_v63   ;;  %691 = vperm.xlu0 %1574, %v471_v0   ;;  %v492_v63 = vadd.s32 144, %v1709_v3  ;;  %v488_v0 = vadd.s32 112, %v1709_v3 }
  0x74   : > { %269 = vadd.xlane.f32.xlu0 %v268_v19  ;;  %v497_v19 = vadd.s32 184, %v1709_v3 }
  0x98   : > { %v552_v24 = vpop.permute.xlu1 %551  ;;  %v542_v25 = vpop.permute.xlu0 %541 }
  0x99   : > { %vm715_vm3 = vcmp.gt.f32.partialorder %v552_v24, %v1745_v23  ;;  %vm779_vm4 = vcmp.eq.f32.partialorder %v552_v24, %v1745_v23  ;;  %vm711_vm5 = vcmp.gt.f32.partialorder %v542_v25, %v1745_v23  ;;  %vm775_vm6 = vcmp.eq.f32.partialorder %v542_v25, %v1745_v23 }
  0x9a   : > { %vm710_vm7 = vcmp.gt.f32.partialorder %v542_v25, %v1741_v22  ;;  %vm774_vm8 = vcmp.eq.f32.partialorder %v542_v25, %v1741_v22  ;;  %vm1756_vm9 = vmor %vm715_vm3, %vm779_vm4  ;;  %vm840_vm4 = vcmp.lt.s32.totalorder %v475_v26, %v1737_v21  ;;  %v496_v25 = vadd.s32 176, %v1709_v3 }
  0x9b   : > { %vm1760_vm10 = vmor %vm711_vm5, %vm775_vm6 }
  0x9c   : > { %v557_v29 = vpop.permute.xlu1 %556  ;;  %vm902_vm11 = vmand %vm774_vm8, %vm838_vm2  ;;  %v547_v30 = vpop.permute.xlu0 %546 }
  0x9d   : > { %vm1764_vm12 = vmor %vm710_vm7, %vm902_vm11  ;;  %vm717_vm13 = vcmp.gt.f32.partialorder %v557_v29, %v1745_v23  ;;  %vm781_vm14 = vcmp.eq.f32.partialorder %v557_v29, %v1745_v23  ;;  %vm713_vm15 = vcmp.gt.f32.partialorder %v547_v30, %v1745_v23  ;;  %vm777_vm0 = vcmp.eq.f32.partialorder %v547_v30, %v1745_v23 }
  0x9e   : > { %vm776_vm3 = vcmp.eq.f32.partialorder %v547_v30, %v1741_v22  ;;  %vm1775_vm2 = vmor %vm717_vm13, %vm781_vm14  ;;  %vm712_vm6 = vcmp.gt.f32.partialorder %v547_v30, %v1741_v22  ;;  %vm778_vm11 = vcmp.eq.f32.partialorder %v552_v24, %v1741_v22  ;;  %vm842_vm13 = vcmp.lt.s32.totalorder %v476_v32, %v1737_v21 }
  0x9f   : > { %vm969_vm5 = vmor %vm713_vm15, %vm777_vm0  ;;  %vm780_vm14 = vcmp.eq.f32.partialorder %v557_v29, %v1741_v22  ;;  %vm844_vm0 = vcmp.lt.s32.totalorder %v477_v34, %v1737_v21  ;;  %v501_v34 = vadd.s32 216, %v1709_v3 }
  0xa0   : > { %vm1495_vm7 = vmpackc.low %vm969_vm5, %vm1760_vm10  ;;  %v562_v36 = vpop.permute.xlu0 %561  ;;  %v567_v37 = vpop.permute.xlu1 %566 }
  0xa1   : > { %1496 = vmatprep.subr.msk.bf16.mxu0 %vm1495_vm7, %v1593_v35  ;;  %vm904_vm8 = vmand %vm776_vm3, %vm840_vm4  ;;  %vm714_vm3 = vcmp.gt.f32.partialorder %v552_v24, %v1741_v22  ;;  %vm716_vm4 = vcmp.gt.f32.partialorder %v557_v29, %v1741_v22  ;;  %vm783_vm7 = vcmp.eq.f32.partialorder %v562_v36, %v1745_v23 }
  0xa2   : > { %vm968_vm1 = vmor %vm712_vm6, %vm904_vm8 }
  0xa3   : > { %vm1497_vm15 = vmpackc.low %vm968_vm1, %vm1764_vm12  ;;  %vm719_vm12 = vcmp.gt.f32.partialorder %v562_v36, %v1745_v23 }
  0xa4   : > { %1498 = vmatpush1.bf16.msk.msra.mxu0 %vm1497_vm15, %v1593_v35  ;;  %vm1499_vm10 = vmpackc.low %vm1775_vm2, %vm1756_vm9  ;;  %vm721_vm9 = vcmp.gt.f32.partialorder %v567_v37, %v1745_v23  ;;  %vm785_vm2 = vcmp.eq.f32.partialorder %v567_v37, %v1745_v23  ;;  %v572_v40 = vpop.permute.xlu0 %571  ;;  %v577_v41 = vpop.permute.xlu1 %576 }
  0xa5   : > { %1500 = vmatprep.subr.msk.bf16.mxu0 %vm1499_vm10, %v1593_v35  ;;  %vm906_vm5 = vmand %vm778_vm11, %vm842_vm13  ;;  %vm782_vm10 = vcmp.eq.f32.partialorder %v562_v36, %v1741_v22  ;;  %vm846_vm13 = vcmp.lt.s32.totalorder %v478_v38, %v1737_v21  ;;  %v500_v38 = vadd.s32 208, %v1709_v3 }
  0xa6   : > { %vm908_vm6 = vmand %vm780_vm14, %vm844_vm0  ;;  %vm784_vm14 = vcmp.eq.f32.partialorder %v567_v37, %v1741_v22 }
  0xa7   : > { %vm970_vm1 = vmor %vm714_vm3, %vm906_vm5  ;;  %vm848_vm3 = vcmp.lt.s32.totalorder %v479_v39, %v1737_v21  ;;  %v1594_v39 = vmov 1966171168  }
  0xa8   : > { %vm972_vm8 = vmor %vm716_vm4, %vm908_vm6  ;;  %vm718_vm4 = vcmp.gt.f32.partialorder %v562_v36, %v1741_v22  ;;  %vm720_vm6 = vcmp.gt.f32.partialorder %v567_v37, %v1741_v22  ;;  %v582_v44 = vpop.permute.xlu0 %581  ;;  %v587_v45 = vpop.permute.xlu1 %586 }
  0xa9   : > { %vm1501_vm15 = vmpackc.low %vm972_vm8, %vm970_vm1 }
  0xaa   : > { %1502 = vmatpush1.bf16.msk.msra.mxu0 %vm1501_vm15, %v1593_v35  ;;  %vm975_vm11 = vmor %vm719_vm12, %vm783_vm7  ;;  %vm723_vm7 = vcmp.gt.f32.partialorder %v572_v40, %v1745_v23  ;;  %vm725_vm15 = vcmp.gt.f32.partialorder %v577_v41, %v1745_v23 }
  0xab   : > { %vm977_vm0 = vmor %vm721_vm9, %vm785_vm2  ;;  %vm787_vm9 = vcmp.eq.f32.partialorder %v572_v40, %v1745_v23 }
  0xac   : > { %vm1503_vm5 = vmpackc.low %vm977_vm0, %vm975_vm11  ;;  %vm789_vm11 = vcmp.eq.f32.partialorder %v577_v41, %v1745_v23  ;;  %v592_v48 = vpop.permute.xlu0 %591  ;;  %v597_v49 = vpop.permute.xlu1 %596 }
  0xad   : > { %1504 = vmatprep.subr.msk.bf16.mxu0 %vm1503_vm5, %v1593_v35  ;;  %vm910_vm1 = vmand %vm782_vm10, %vm846_vm13  ;;  %vm786_vm5 = vcmp.eq.f32.partialorder %v572_v40, %v1741_v22  ;;  %vm850_vm13 = vcmp.lt.s32.totalorder %v480_v42, %v1737_v21 }
  0xae   : > { %vm912_vm8 = vmand %vm784_vm14, %vm848_vm3  ;;  %vm788_vm14 = vcmp.eq.f32.partialorder %v577_v41, %v1741_v22 }
  0xaf   : > { %vm974_vm12 = vmor %vm718_vm4, %vm910_vm1  ;;  %vm852_vm4 = vcmp.lt.s32.totalorder %v481_v43, %v1737_v21 }
  0xb0   : > { %vm976_vm2 = vmor %vm720_vm6, %vm912_vm8  ;;  %vm722_vm6 = vcmp.gt.f32.partialorder %v572_v40, %v1741_v22  ;;  %vm724_vm8 = vcmp.gt.f32.partialorder %v577_v41, %v1741_v22  ;;  %v602_v52 = vpop.permute.xlu0 %601  ;;  %v607_v53 = vpop.permute.xlu1 %606  ;;  %v503_v41 = vadd.s32 232, %v1709_v3 }
  0xb1   : > { %vm1505_vm0 = vmpackc.low %vm976_vm2, %vm974_vm12 }
  0xb2   : > { %1506 = vmatpush1.bf16.msk.msra.mxu0 %vm1505_vm0, %v1593_v35  ;;  %vm979_vm10 = vmor %vm723_vm7, %vm787_vm9  ;;  %vm727_vm9 = vcmp.gt.f32.partialorder %v582_v44, %v1745_v23  ;;  %vm729_vm0 = vcmp.gt.f32.partialorder %v587_v45, %v1745_v23 }
  0xb3   : > { %vm981_vm3 = vmor %vm725_vm15, %vm789_vm11  ;;  %vm791_vm15 = vcmp.eq.f32.partialorder %v582_v44, %v1745_v23 }
  0xb4   : > { %vm1507_vm1 = vmpackc.low %vm981_vm3, %vm979_vm10  ;;  %vm793_vm10 = vcmp.eq.f32.partialorder %v587_v45, %v1745_v23  ;;  %v1854_v54 = vpop.permute.xlu0 %611  ;;  %v1858_v55 = vpop.permute.xlu1 %616 }
  0xb5   : > { %1508 = vmatprep.subr.msk.bf16.mxu0 %vm1507_vm1, %v1593_v35  ;;  %vm914_vm12 = vmand %vm786_vm5, %vm850_vm13  ;;  %vm790_vm1 = vcmp.eq.f32.partialorder %v582_v44, %v1741_v22  ;;  %vm854_vm13 = vcmp.lt.s32.totalorder %v482_v46, %v1737_v21 }
  0xb6   : > { %vm916_vm2 = vmand %vm788_vm14, %vm852_vm4  ;;  %vm792_vm14 = vcmp.eq.f32.partialorder %v587_v45, %v1741_v22 }
  0xb7   : > { %vm978_vm7 = vmor %vm722_vm6, %vm914_vm12  ;;  %vm856_vm6 = vcmp.lt.s32.totalorder %v483_v47, %v1737_v21  ;;  %vm726_vm12 = vcmp.gt.f32.partialorder %v582_v44, %v1741_v22  ;;  %v502_v44 = vadd.s32 224, %v1709_v3  ;;  %v505_v47 = vadd.s32 248, %v1709_v3 }
  0xb8   : > { %vm980_vm11 = vmor %vm724_vm8, %vm916_vm2  ;;  %vm728_vm2 = vcmp.gt.f32.partialorder %v587_v45, %v1741_v22  ;;  %v1869_v58 = vpop.permute.xlu0 %621  ;;  %v1872_v59 = vpop.permute.xlu1 %626 }
  0xb9   : > { %vm1509_vm3 = vmpackc.low %vm980_vm11, %vm978_vm7 }
  0xba   : > { %1510 = vmatpush1.bf16.msk.msra.mxu0 %vm1509_vm3, %v1593_v35  ;;  %vm983_vm5 = vmor %vm727_vm9, %vm791_vm15  ;;  %vm731_vm15 = vcmp.gt.f32.partialorder %v592_v48, %v1745_v23  ;;  %vm795_vm3 = vcmp.eq.f32.partialorder %v592_v48, %v1745_v23 }
  0xbb   : > { %vm985_vm4 = vmor %vm729_vm0, %vm793_vm10  ;;  %vm733_vm10 = vcmp.gt.f32.partialorder %v597_v49, %v1745_v23 }
  0xbc   : > { %vm1511_vm8 = vmpackc.low %vm985_vm4, %vm983_vm5  ;;  %vm797_vm5 = vcmp.eq.f32.partialorder %v597_v49, %v1745_v23  ;;  %v1892_v2 = vpop.permute.xlu0 %631  ;;  %v1899_v7 = vpop.permute.xlu1 %636 }
  0xbd   : > { %1512 = vmatprep.subr.msk.bf16.mxu0 %vm1511_vm8, %v1593_v35  ;;  %vm918_vm7 = vmand %vm790_vm1, %vm854_vm13  ;;  %vm794_vm8 = vcmp.eq.f32.partialorder %v592_v48, %v1741_v22  ;;  %vm858_vm13 = vcmp.lt.s32.totalorder %v484_v50, %v1737_v21  ;;  %v504_v50 = vadd.s32 240, %v1709_v3 }
  0xbe   : > { %vm920_vm11 = vmand %vm792_vm14, %vm856_vm6  ;;  %vm796_vm14 = vcmp.eq.f32.partialorder %v597_v49, %v1741_v22 }
  0xbf   : > { %vm982_vm9 = vmor %vm726_vm12, %vm918_vm7  ;;  %vm860_vm12 = vcmp.lt.s32.totalorder %v485_v51, %v1737_v21  ;;  %vm730_vm7 = vcmp.gt.f32.partialorder %v592_v48, %v1741_v22  ;;  %v2191_v48 = vmov 0  ;;  %v2193_v51 = vmov 0 }
  0xc0   : > { %vm984_vm0 = vmor %vm728_vm2, %vm920_vm11  ;;  %vm732_vm11 = vcmp.gt.f32.partialorder %v597_v49, %v1741_v22  ;;  %v1946_v16 = vpop.permute.xlu1 %646  ;;  %v642_v18 = vpop.permute.xlu0 %641 }
  0xc1   : > { %vm1513_vm4 = vmpackc.low %vm984_vm0, %vm982_vm9 }
  0xc2   : > { %1514 = vmatpush1.bf16.msk.msra.mxu0 %vm1513_vm4, %v1593_v35  ;;  %vm987_vm1 = vmor %vm731_vm15, %vm795_vm3  ;;  %vm735_vm15 = vcmp.gt.f32.partialorder %v602_v52, %v1745_v23  ;;  %vm799_vm3 = vcmp.eq.f32.partialorder %v602_v52, %v1745_v23 }
  0xc3   : > { %vm989_vm6 = vmor %vm733_vm10, %vm797_vm5  ;;  %vm737_vm5 = vcmp.gt.f32.partialorder %v607_v53, %v1745_v23 }
  0xc4   : > { %vm1515_vm2 = vmpackc.low %vm989_vm6, %vm987_vm1  ;;  %vm801_vm1 = vcmp.eq.f32.partialorder %v607_v53, %v1745_v23  ;;  %v1973_v24 = vpop.permute.xlu1 %656  ;;  %v652_v27 = vpop.permute.xlu0 %651 }
  0xc5   : > { %1516 = vmatprep.subr.msk.bf16.mxu0 %vm1515_vm2, %v1593_v35  ;;  %vm922_vm9 = vmand %vm794_vm8, %vm858_vm13  ;;  %vm862_vm2 = vcmp.lt.s32.totalorder %v486_v56, %v1737_v21 }
  0xc6   : > { %vm924_vm0 = vmand %vm796_vm14, %vm860_vm12  ;;  %vm798_vm14 = vcmp.eq.f32.partialorder %v602_v52, %v1741_v22 }
  0xc7   : > { %vm986_vm4 = vmor %vm730_vm7, %vm922_vm9  ;;  %vm800_vm7 = vcmp.eq.f32.partialorder %v607_v53, %v1741_v22  ;;  %vm734_vm9 = vcmp.gt.f32.partialorder %v602_v52, %v1741_v22 }
  0xc8   : > { %vm988_vm10 = vmor %vm732_vm11, %vm924_vm0  ;;  %vm864_vm11 = vcmp.lt.s32.totalorder %v487_v57, %v1737_v21  ;;  %vm736_vm0 = vcmp.gt.f32.partialorder %v607_v53, %v1741_v22  ;;  %v2003_v30 = vpop.permute.xlu1 %666  ;;  %v662_v33 = vpop.permute.xlu0 %661  ;;  %v2195_v53 = vmov 0 }
  0xc9   : > { %vm1517_vm6 = vmpackc.low %vm988_vm10, %vm986_vm4  ;;  %vm739_vm10 = vcmp.gt.f32.partialorder %v1854_v54, %v1745_v23 }
  0xca   : > { %1518 = vmatpush1.bf16.msk.msra.mxu0 %vm1517_vm6, %v1593_v35  ;;  %vm991_vm8 = vmor %vm735_vm15, %vm799_vm3  ;;  %vm741_vm6 = vcmp.gt.f32.partialorder %v1858_v55, %v1745_v23 }
  0xcb   : > { %vm993_vm13 = vmor %vm737_vm5, %vm801_vm1  ;;  %vm803_vm5 = vcmp.eq.f32.partialorder %v1854_v54, %v1745_v23 }
  0xcc   : > { %vm1519_vm12 = vmpackc.low %vm993_vm13, %vm991_vm8  ;;  %vm805_vm8 = vcmp.eq.f32.partialorder %v1858_v55, %v1745_v23  ;;  %v677_v37 = vpop.permute.xlu1 %676  ;;  %v672_v40 = vpop.permute.xlu0 %671 }
  0xcd   : > { %1520 = vmatprep.subr.msk.bf16.mxu0 %vm1519_vm12, %v1593_v35  ;;  %vm926_vm4 = vmand %vm798_vm14, %vm862_vm2  ;;  %vm873_vm14 = vcmp.lt.s32.totalorder %v491_v61, %v1877_v60  ;;  %vm809_vm12 = vcmp.eq.f32.partialorder %v1872_v59, %v1745_v23 }
  0xce   : > { %vm928_vm15 = vmand %vm800_vm7, %vm864_vm11  ;;  %vm871_vm7 = vcmp.lt.s32.totalorder %v490_v62, %v1877_v60  ;;  %vm807_vm11 = vcmp.eq.f32.partialorder %v1869_v58, %v1745_v23 }
  0xcf   : > { %vm990_vm3 = vmor %vm734_vm9, %vm926_vm4 }
  0xd0   : > { %vm992_vm1 = vmor %vm736_vm0, %vm928_vm15  ;;  %vm802_vm0 = vcmp.eq.f32.partialorder %v1854_v54, %v1741_v22  ;;  %vm875_vm15 = vcmp.lt.s32.totalorder %v492_v63, %v1877_v60  ;;  %v687_v43 = vpop.permute.xlu1 %686  ;;  %v682_v46 = vpop.permute.xlu0 %681 }
  0xd1   : > { %vm1521_vm13 = vmpackc.low %vm992_vm1, %vm990_vm3  ;;  %vm811_vm3 = vcmp.eq.f32.partialorder %v1892_v2, %v1745_v23 }
  0xd2   : > { %1522 = vmatpush1.bf16.msk.msra.mxu0 %vm1521_vm13, %v1593_v35  ;;  %vm995_vm2 = vmor %vm739_vm10, %vm803_vm5  ;;  %vm866_vm10 = vcmp.lt.s32.totalorder %v488_v0, %v1737_v21  ;;  %vm804_vm5 = vcmp.eq.f32.partialorder %v1858_v55, %v1741_v22  ;;  %vm868_vm13 = vcmp.lt.s32.totalorder %v489_v4, %v1737_v21 }
  0xd3   : > { %vm997_vm9 = vmor %vm741_vm6, %vm805_vm8  ;;  %vm877_vm6 = vcmp.lt.s32.totalorder %v493_v1, %v1877_v60  ;;  %vm813_vm8 = vcmp.eq.f32.partialorder %v1899_v7, %v1745_v23 }
  0xd4   : > { %vm1523_vm4 = vmpackc.low %vm997_vm9, %vm995_vm2  ;;  %vm738_vm9 = vcmp.gt.f32.partialorder %v1854_v54, %v1741_v22  ;;  %v697_v49 = vpop.permute.xlu1 %696  ;;  %v692_v52 = vpop.permute.xlu0 %691 }
  0xd5   : > { %vm1915_vm1 = vmand %vm809_vm12, %vm873_vm14  ;;  %1524 = vmatprep.subr.msk.bf16.mxu0 %vm1523_vm4, %v1593_v35  ;;  %vm740_vm12 = vcmp.gt.f32.partialorder %v1858_v55, %v1741_v22 }
  0xd6   : > { %v2166_v8 = vsel %vm1915_vm1, 4294967295, %v2165_v8  ;;  %vm1924_vm2 = vmand %vm807_vm11, %vm871_vm7  ;;  %vm743_vm11 = vcmp.gt.f32.partialorder %v1869_v58, %v1745_v23 }
  0xd7   : > { %vm1930_vm14 = vmand %vm811_vm3, %vm875_vm15  ;;  %vm745_vm3 = vcmp.gt.f32.partialorder %v1872_v59, %v1745_v23 }
  0xd8   : > { %v2170_v10 = vsel %vm1930_vm14, 4294967295, %v2169_v10  ;;  %vm930_vm4 = vmand %vm802_vm0, %vm866_vm10 }
  0xd9   : > { %vm1939_vm1 = vmand %vm813_vm8, %vm877_vm6  ;;  %vm817_vm6 = vcmp.eq.f32.partialorder %v1946_v16, %v1745_v23  ;;  %vm2173_vm8 = vnez %v2166_v8 }
  0xda   : > { %vm932_vm7 = vmand %vm804_vm5, %vm868_vm13  ;;  %vm881_vm5 = vcmp.lt.s32.totalorder %v495_v12, %v1877_v60 }
  0xdb   : > { %vm994_vm15 = vmor %vm738_vm9, %vm930_vm4  ;;  %vm879_vm9 = vcmp.lt.s32.totalorder %v494_v17, %v1877_v60  ;;  %vm815_vm4 = vcmp.eq.f32.partialorder %v642_v18, %v1745_v23 }
  0xdc   : > { %vm996_vm14 = vmor %vm740_vm12, %vm932_vm7  ;;  %vm742_vm12 = vcmp.gt.f32.partialorder %v1869_v58, %v1741_v22 }
  0xdd   : > { %vm1525_vm0 = vmpackc.low %vm996_vm14, %vm994_vm15  ;;  %vm744_vm14 = vcmp.gt.f32.partialorder %v1872_v59, %v1741_v22  ;;  %vm749_vm15 = vcmp.gt.f32.partialorder %v1899_v7, %v1745_v23 }
  0xde   : > { %1526 = vmatpush1.bf16.msk.msra.mxu0 %vm1525_vm0, %v1593_v35  ;;  %vm999_vm10 = vmor %vm743_vm11, %vm1924_vm2  ;;  %vm747_vm2 = vcmp.gt.f32.partialorder %v1892_v2, %v1745_v23 }
  0xdf   : > { %vm1001_vm13 = vmor %vm745_vm3, %vm2173_vm8  ;;  %vm821_vm8 = vcmp.eq.f32.partialorder %v1973_v24, %v1745_v23 }
  0xe0   : > { %vm1527_vm7 = vmpackc.low %vm1001_vm13, %vm999_vm10  ;;  %vm2178_vm10 = vnez %v2170_v10 }
  0xe1   : > { %1528 = vmatprep.subr.msk.bf16.mxu0 %vm1527_vm7, %v1593_v35  ;;  %vm1969_vm11 = vmand %vm817_vm6, %vm881_vm5  ;;  %vm885_vm6 = vcmp.lt.s32.totalorder %v497_v19, %v1877_v60 }
  0xe2   : > { %vm1978_vm3 = vmand %vm815_vm4, %vm879_vm9  ;;  %vm883_vm9 = vcmp.lt.s32.totalorder %v496_v25, %v1877_v60  ;;  %vm819_vm4 = vcmp.eq.f32.partialorder %v652_v27, %v1745_v23 }
  0xe3   : > { %vm1529_vm0 = vmpackc.low %vm744_vm14, %vm742_vm12  ;;  %vm748_vm14 = vcmp.gt.f32.partialorder %v1899_v7, %v1741_v22  ;;  %vm746_vm12 = vcmp.gt.f32.partialorder %v1892_v2, %v1741_v22 }
  0xe4   : > { %1530 = vmatpush1.bf16.msk.msra.mxu0 %vm1529_vm0, %v1593_v35  ;;  %vm1003_vm5 = vmor %vm747_vm2, %vm2178_vm10  ;;  %vm751_vm2 = vcmp.gt.f32.partialorder %v642_v18, %v1745_v23 }
  0xe5   : > { %vm1005_vm13 = vmor %vm749_vm15, %vm1939_vm1  ;;  %vm753_vm1 = vcmp.gt.f32.partialorder %v1946_v16, %v1745_v23 }
  0xe6   : > { %vm1531_vm7 = vmpackc.low %vm1005_vm13, %vm1003_vm5 }
  0xe7   : > { %1532 = vmatprep.subr.msk.bf16.mxu0 %vm1531_vm7, %v1593_v35  ;;  %vm1999_vm0 = vmand %vm821_vm8, %vm885_vm6  ;;  %vm889_vm6 = vcmp.lt.s32.totalorder %v499_v28, %v1877_v60  ;;  %vm825_vm8 = vcmp.eq.f32.partialorder %v2003_v30, %v1745_v23 }
  0xe8   : > { %vm2008_vm15 = vmand %vm819_vm4, %vm883_vm9  ;;  %vm887_vm9 = vcmp.lt.s32.totalorder %v498_v31, %v1877_v60  ;;  %vm823_vm4 = vcmp.eq.f32.partialorder %v662_v33, %v1745_v23 }
  0xe9   : > { %vm1533_vm10 = vmpackc.low %vm748_vm14, %vm746_vm12  ;;  %vm752_vm14 = vcmp.gt.f32.partialorder %v1946_v16, %v1741_v22  ;;  %vm750_vm12 = vcmp.gt.f32.partialorder %v642_v18, %v1741_v22 }
  0xea   : > { %1534 = vmatpush1.bf16.msk.msra.mxu0 %vm1533_vm10, %v1593_v35  ;;  %vm1007_vm5 = vmor %vm751_vm2, %vm1978_vm3  ;;  %vm755_vm3 = vcmp.gt.f32.partialorder %v652_v27, %v1745_v23 }
  0xeb   : > { %vm1009_vm13 = vmor %vm753_vm1, %vm1969_vm11  ;;  %vm757_vm11 = vcmp.gt.f32.partialorder %v1973_v24, %v1745_v23 }
  0xec   : > { %vm1535_vm7 = vmpackc.low %vm1009_vm13, %vm1007_vm5 }
  0xed   : > { %1536 = vmatprep.subr.msk.bf16.mxu0 %vm1535_vm7, %v1593_v35  ;;  %vm2028_vm2 = vmand %vm825_vm8, %vm889_vm6  ;;  %vm893_vm6 = vcmp.lt.s32.totalorder %v501_v34, %v1877_v60  ;;  %vm829_vm8 = vcmp.eq.f32.partialorder %v677_v37, %v1745_v23  ;;  %vm891_vm7 = vcmp.lt.s32.totalorder %v500_v38, %v1877_v60 }
  0xee   : > { %vm2035_vm1 = vmand %vm823_vm4, %vm887_vm9  ;;  %vm827_vm9 = vcmp.eq.f32.partialorder %v672_v40, %v1745_v23  ;;  %vm756_vm4 = vcmp.gt.f32.partialorder %v1973_v24, %v1741_v22 }
  0xef   : > { %vm1537_vm10 = vmpackc.low %vm752_vm14, %vm750_vm12  ;;  %vm754_vm14 = vcmp.gt.f32.partialorder %v652_v27, %v1741_v22 }
  0xf0   : > { %1538 = vmatpush1.bf16.msk.msra.mxu0 %vm1537_vm10, %v1593_v35  ;;  %vm1011_vm5 = vmor %vm755_vm3, %vm2008_vm15  ;;  %vm759_vm15 = vcmp.gt.f32.partialorder %v662_v33, %v1745_v23 }
  0xf1   : > { %vm1013_vm13 = vmor %vm757_vm11, %vm1999_vm0  ;;  %vm761_vm0 = vcmp.gt.f32.partialorder %v2003_v30, %v1745_v23 }
  0xf2   : > { %vm1539_vm12 = vmpackc.low %vm1013_vm13, %vm1011_vm5 }
  0xf3   : > { %1540 = vmatprep.subr.msk.bf16.mxu0 %vm1539_vm12, %v1593_v35  ;;  %vm2054_vm3 = vmand %vm829_vm8, %vm893_vm6  ;;  %vm897_vm6 = vcmp.lt.s32.totalorder %v503_v41, %v1877_v60  ;;  %vm833_vm8 = vcmp.eq.f32.partialorder %v687_v43, %v1745_v23  ;;  %vm895_vm12 = vcmp.lt.s32.totalorder %v502_v44, %v1877_v60 }
  0xf4   : > { %vm2061_vm11 = vmand %vm827_vm9, %vm891_vm7  ;;  %vm831_vm7 = vcmp.eq.f32.partialorder %v682_v46, %v1745_v23  ;;  %vm760_vm9 = vcmp.gt.f32.partialorder %v2003_v30, %v1741_v22 }
  0xf5   : > { %vm1541_vm10 = vmpackc.low %vm756_vm4, %vm754_vm14  ;;  %vm758_vm4 = vcmp.gt.f32.partialorder %v662_v33, %v1741_v22 }
  0xf6   : > { %1542 = vmatpush1.bf16.msk.msra.mxu0 %vm1541_vm10, %v1593_v35  ;;  %vm1015_vm5 = vmor %vm759_vm15, %vm2035_vm1  ;;  %vm763_vm1 = vcmp.gt.f32.partialorder %v672_v40, %v1745_v23 }
  0xf7   : > { %vm1017_vm13 = vmor %vm761_vm0, %vm2028_vm2  ;;  %vm765_vm2 = vcmp.gt.f32.partialorder %v677_v37, %v1745_v23 }
  0xf8   : > { %vm1543_vm14 = vmpackc.low %vm1017_vm13, %vm1015_vm5 }
  0xf9   : > { %1544 = vmatprep.subr.msk.bf16.mxu0 %vm1543_vm14, %v1593_v35  ;;  %vm2080_vm15 = vmand %vm833_vm8, %vm897_vm6  ;;  %vm901_vm6 = vcmp.lt.s32.totalorder %v505_v47, %v1877_v60  ;;  %vm837_vm8 = vcmp.eq.f32.partialorder %v697_v49, %v1745_v23  ;;  %vm899_vm14 = vcmp.lt.s32.totalorder %v504_v50, %v1877_v60 }
  0xfa   : > { %v2192_v48 = vsel %vm2080_vm15, 4294967295, %v2191_v48  ;;  %vm2086_vm0 = vmand %vm831_vm7, %vm895_vm12  ;;  %vm835_vm12 = vcmp.eq.f32.partialorder %v692_v52, %v1745_v23  ;;  %vm764_vm7 = vcmp.gt.f32.partialorder %v677_v37, %v1741_v22  ;;  %vm768_vm15 = vcmp.gt.f32.partialorder %v687_v43, %v1741_v22 }
  0xfb   : > { %v2194_v51 = vsel %vm2086_vm0, 4294967295, %v2193_v51  ;;  %vm1545_vm10 = vmpackc.low %vm760_vm9, %vm758_vm4  ;;  %vm762_vm9 = vcmp.gt.f32.partialorder %v672_v40, %v1741_v22  ;;  %vm766_vm0 = vcmp.gt.f32.partialorder %v682_v46, %v1741_v22  ;;  %v1258_v40 = vunpack.c.l.s4 %v1594_v39 }
  0xfc   : > { %1546 = vmatpush1.bf16.msk.msra.mxu0 %vm1545_vm10, %v1593_v35  ;;  %vm1019_vm5 = vmor %vm763_vm1, %vm2061_vm11  ;;  %vm767_vm10 = vcmp.gt.f32.partialorder %v682_v46, %v1745_v23  ;;  %vm769_vm1 = vcmp.gt.f32.partialorder %v687_v43, %v1745_v23 }
  0xfd   : > { %vm1021_vm13 = vmor %vm765_vm2, %vm2054_vm3 }
  0xfe   : > { %vm1547_vm4 = vmpackc.low %vm1021_vm13, %vm1019_vm5  ;;  %vm2199_vm5 = vnez %v2194_v51 }
  0xff   : > { %1548 = vmatprep.subr.msk.bf16.mxu0 %vm1547_vm4, %v1593_v35  ;;  %vm2103_vm11 = vmand %vm837_vm8, %vm901_vm6  ;;  %vm771_vm6 = vcmp.gt.f32.partialorder %v692_v52, %v1745_v23  ;;  %vm2200_vm8 = vnez %v2192_v48  ;;  %v1259_v48 = vunpack.c.0.s8 %v1258_v40 }
 0x100   : > { %v2196_v53 = vsel %vm2103_vm11, 4294967295, %v2195_v53  ;;  %vm2108_vm3 = vmand %vm835_vm12, %vm899_vm14  ;;  %vm773_vm14 = vcmp.gt.f32.partialorder %v697_v49, %v1745_v23  ;;  %vm770_vm11 = vcmp.gt.f32.partialorder %v692_v52, %v1741_v22 }
 0x101   : > { %vm1549_vm2 = vmpackc.low %vm764_vm7, %vm762_vm9  ;;  %vm772_vm9 = vcmp.gt.f32.partialorder %v697_v49, %v1741_v22  ;;  %v270_v23 = vpop.xlane.xlu0 %269  ;;  %v1262_v54 = vsub.s32 %v1259_v48, %v1709_v3 }
 0x102   : > { %1550 = vmatpush1.bf16.msk.msra.mxu0 %vm1549_vm2, %v1593_v35  ;;  %vm1023_vm13 = vmor %vm767_vm10, %vm2199_vm5  ;;  %vm2201_vm2 = vnez %v2196_v53  ;;  %v271_v55 = vrot.slane %v270_v23, 4 }
 0x103   : > { %vm1025_vm4 = vmor %vm769_vm1, %vm2200_vm8 }
 0x104   : > { %vm1551_vm12 = vmpackc.low %vm1025_vm4, %vm1023_vm13  ;;  %v272_v56 = vadd.f32 %v271_v55, %v270_v23  ;;  %vm1298_vm13 = vcmask 0  }
 0x105   : > { %1552 = vmatprep.subr.msk.bf16.mxu0 %vm1551_vm12, %v1593_v35  ;;  %vm1553_vm7 = vmpackc.low %vm768_vm15, %vm766_vm0 }
 0x106   : > { %1554 = vmatpush1.bf16.msk.msra.mxu0 %vm1553_vm7, %v1593_v35  ;;  %vm1027_vm10 = vmor %vm771_vm6, %vm2108_vm3  ;;  %v273_v22 = vrot.slane %v272_v56, 2 }
 0x107   : > { %vm1029_vm5 = vmor %vm773_vm14, %vm2201_vm2 }
 0x108   : > { %vm1555_vm1 = vmpackc.low %vm1029_vm5, %vm1027_vm10  ;;  %v274_v57 = vadd.f32 %v273_v22, %v272_v56  ;;  %v1253_v56 = vmax.f32 %v1735_v20, 0.0 }
 0x109   : > { %1556 = vmatprep.subr.msk.bf16.mxu0 %vm1555_vm1, %v1593_v35  ;;  %vm1557_vm8 = vmpackc.low %vm772_vm9, %vm770_vm11  ;;  %vm2202_vm11 = vcmask 1040384  }
 0x10a   : > { %1558 = vmatpush1.bf16.msk.msra.mxu0 %vm1557_vm8, %v1593_v35  ;;  %v275_v58 = vrot.slane %v274_v57, 1  ;;  %vm2203_vm3 = vmmov %vm2202_vm11 }
 0x10c   : > { %v276_v59 = vadd.f32 %v275_v58, %v274_v57 }
 0x10d   : > { %1174 = vmatmul.mubr.f32.vlgmr.msra.gmra.mrb[0].mxu0 %v1723_v13 }
 0x10e   : > { %1559 = vpush %v276_v59 }
 0x13f   : > { %s1560_s5 = spop %1559 }
 0x140   : > { %v1184_v60 = vstv %s1560_s5 }
 0x1e0   : > { %v1175_v61 = vpop.f32.mrb[0].mxu0 }
 0x1e1   : > { %v1180_v62 = vadd.f32 %v1175_v61, %v1726_v14  ;;  %v1182_v63 = vadd.f32 1.0, %v1175_v61  ;;  %v1211_v0 = vadd.f32 %v1184_v60, %v1175_v61  ;;  %v1177_v1 = vpop.f32.mrb[1].mxu0  ;;  %v1215_v2 = vrot.slane %v1175_v61, 1 }
 0x1e2   : > { %v1181_v35 = vadd.f32 %v1177_v1, %v1729_v15  ;;  %v1183_v13 = vadd.f32 1.0, %v1177_v1  ;;  %vm1209_vm15 = vcmp.lt.f32.partialorder %v1175_v61, 0.5  ;;  %v1212_v12 = vadd.f32 %v1184_v60, %v1177_v1 }
 0x1e3   : > { %v1185_v4 = vadd.f32 %v1184_v60, %v1182_v63  ;;  %v1189_v7 = vrot.slane %v1180_v62, 1  ;;  %v1219_v8 = vsub.f32 %v1211_v0, %v1215_v2  ;;  %v1216_v16 = vrot.slane %v1177_v1, 1 }
 0x1e4   : > { %v1186_v9 = vadd.f32 %v1184_v60, %v1183_v13  ;;  %v1190_v10 = vrot.slane %v1181_v35, 1  ;;  %vm1210_vm0 = vcmp.lt.f32.partialorder %v1177_v1, 0.5  ;;  %v1223_v26 = vsub.f32 %v1184_v60, %v1175_v61 }
 0x1e5   : > { %v1193_v11 = vsub.f32 %v1185_v4, %v1189_v7  ;;  %v1221_v17 = vsel %vm1209_vm15, 1.0, %v1219_v8  ;;  %v1220_v21 = vsub.f32 %v1212_v12, %v1216_v16  ;;  %v1224_v30 = vsub.f32 %v1184_v60, %v1177_v1 }
 0x1e6   : > { %v1194_v18 = vsub.f32 %v1186_v9, %v1190_v10  ;;  %v1227_v19 = vrot.slane %v1221_v17, 7  ;;  %v1195_v32 = vsub.f32 %v1184_v60, %v1180_v62  ;;  %v1196_v38 = vsub.f32 %v1184_v60, %v1181_v35 }
 0x1e7   : > { %v1199_v14 = vrot.slane %v1193_v11, 7  ;;  %v1222_v15 = vsel %vm1210_vm0, 1.0, %v1220_v21 }
 0x1e8   : > { %v1200_v24 = vrot.slane %v1194_v18, 7  ;;  %1576 = vrcp.f32 %v1227_v19  ;;  %v1228_v25 = vrot.slane %v1222_v15, 7 }
 0x1e9   : > { %1578 = vrcp.f32 %v1199_v14 }
 0x1ea   : > { %1580 = vrcp.f32 %v1228_v25 }
 0x1eb   : > { %1582 = vrcp.f32 %v1200_v24 }
 0x1f2   : > { %v1577_v27 = vpop.eup %1576 }
 0x1f3   : > { %v1579_v28 = vpop.eup %1578  ;;  %v1232_v29 = vmul.f32 %v1577_v27, %v1223_v26 }
 0x1f4   : > { %v1581_v31 = vpop.eup %1580  ;;  %v1204_v37 = vmul.f32 %v1579_v28, %v1195_v32 }
 0x1f5   : > { %v1583_v33 = vpop.eup %1582  ;;  %v1235_v34 = vsub.f32 1.0, %v1232_v29  ;;  %v1234_v36 = vmul.f32 %v1581_v31, %v1224_v30 }
 0x1f6   : > { %v1206_v43 = vmul.f32 %v1583_v33, %v1196_v38  ;;  %v1207_v46 = vsub.f32 1.0, %v1204_v37 }
 0x1f7   : > { %v1239_v41 = vrot.slane %v1235_v34, 1  ;;  %v1236_v42 = vsub.f32 1.0, %v1234_v36 }
 0x1f8   : > { %v1208_v50 = vsub.f32 1.0, %v1206_v43 }
 0x1f9   : > { %v1243_v44 = vsel %vm1209_vm15, 0.0, %v1239_v41  ;;  %v1240_v45 = vrot.slane %v1236_v42, 1 }
 0x1fa   : > { %v1247_v47 = vrot.slane %v1243_v44, 7 }
 0x1fb   : > { %v1244_v49 = vsel %vm1210_vm0, 0.0, %v1240_v45 }
 0x1fc   : > { %v1248_v51 = vrot.slane %v1244_v49, 7  ;;  %v1251_v52 = vsub.f32 %v1207_v46, %v1247_v47 }
 0x1fe   : > { %v1252_v53 = vsub.f32 %v1208_v50, %v1248_v51 }
 0x200   : > { %v1256_v23 = vcombine.low %v1251_v52, %v1252_v53 }
 0x202   : > { %v1263_v55 = vrot.slane %v1256_v23, %v1262_v54 }
 0x204   : > { %v1264_v22 = vcombine.high %v1263_v55, %v1263_v55 }
 0x206   : > { %v1271_v57 = vrot.slane %v1264_v22, %v1262_v54 }
 0x208   : > { %v1273_v58 = vmul.f32 %v1271_v57, %v1253_v56 }
 0x20a   : > { %v1278_v59 = vrot.slane %v1273_v58, %v1715_v5  ;;  %v1282_v60 = vrot.slane %v1273_v58, %v1718_v6 }
 0x20c   : > { %v1285_v61 = vsel %vm2202_vm11, %v1278_v59, 0.0  ;;  %v1286_v62 = vsel %vm2203_vm3, %v1282_v60, 0.0 }
 0x20d   : > { %v1287_v63 = vadd.f32 %v1286_v62, %v1285_v61 }
 0x20f   : > { %1288 = vadd.xlane.f32.xlu1 %v1287_v63 }
 0x29c   : > { %v1289_v0 = vpop.xlane.xlu1 %1288 }
 0x29d   : > { %v1290_v3 = vrot.slane %v1289_v0, 4 }
 0x29f   : > { %v1291_v1 = vadd.f32 %v1290_v3, %v1289_v0 }
 0x2a1   : > { %v1292_v2 = vrot.slane %v1291_v1, 2 }
 0x2a3   : > { %v1293_v35 = vadd.f32 %v1292_v2, %v1291_v1 }
 0x2a5   : > { %v1294_v20 = vrot.slane %v1293_v35, 1 }
 0x2a7   : > { %v1295_v13 = vadd.f32 %v1294_v20, %v1293_v35 }
 0x2a9   : > { %1561 = vpush %v1295_v13 }
 0x2da   : > { %s1562_s9 = spop %1561 }
 0x2db   : > { %v1297_v5 = vstv %s1562_s9 }
 0x2dc   : > { %1299 = vst.msk [vmem:[%s247_s8] sm:$0x1] %vm1298_vm13, %v1297_v5 }
 0x2dd PF: > { %s14_s15 = sadd.s32 1, %s1590_s15  }
 0x2de   : > { %p11_p4 = scmp.ge.s32.totalorder %s14_s15, 4  }
 0x2e0   :  { %13 = sbr.rel (!%p11_p4) target bundleno = 1 (0x1), region = 75 }

</bundles_post_ra>
